<compile_context>
chip_gen: v7x
topology: tpu7x:2x2x1
jax: 0.10.0
libtpu: 0.0.40
codegen_flags: <defaults>
</compile_context>

<pallas_src>
import jax
import jax.numpy as jnp
from jax import lax
from jax.scipy.special import logsumexp as _logsumexp
from jax.experimental import pallas as pl
from jax.experimental.pallas import tpu as pltpu


# ---------------------------------------------------------------------------
# Kernels
# ---------------------------------------------------------------------------

def _categorical_kernel_lane_dense(x_ref, w_ref, b_ref, logits_ref):
    """Small action spaces (D_out < 128): lane-dense [D_out, TB] tile.

    y^T = W @ x^T on the MXU (bf16 operands, f32 accumulation), then a
    per-column (per-example) log-softmax with the reduction over the sublane
    axis.  The output is stored lane-dense so every store is full-width.
    """
    yt = lax.dot_general(
        w_ref[...], x_ref[...],                       # [D_out, D_in] x [TB, D_in]
        dimension_numbers=(((1,), (1,)), ((), ())),   # contract D_in of both
        preferred_element_type=jnp.float32,           # f32 accumulation on the MXU
    ) + b_ref[...]                                    # b: [D_out, 1] f32, broadcast over lanes

    # Softmax math in f32 (v5e VPU/EUP have no bf16 path).  Padded batch
    # columns of the last block only affect their own column -> harmless.
    m = jnp.max(yt, axis=0, keepdims=True)            # [1, TB]
    e = jnp.exp(yt - m)
    log_z = m + jnp.log(jnp.sum(e, axis=0, keepdims=True))
    logits_ref[...] = (yt - log_z).astype(logits_ref.dtype)


def _categorical_kernel_row_major(x_ref, wt_ref, b_ref, logits_ref):
    """Wide heads (D_out >= 128): W pre-transposed once at init -> native A@B."""
    y = lax.dot_general(
        x_ref[...], wt_ref[...],                      # [TB, D_in] x [D_in, D_out]
        dimension_numbers=(((1,), (0,)), ((), ())),   # fully native MXU layout
        preferred_element_type=jnp.float32,
    ) + b_ref[...]                                    # b: [1, D_out] f32
    m = jnp.max(y, axis=-1, keepdims=True)
    e = jnp.exp(y - m)
    log_z = m + jnp.log(jnp.sum(e, axis=-1, keepdims=True))
    logits_ref[...] = (y - log_z).astype(logits_ref.dtype)


# ---------------------------------------------------------------------------
# Tiling / wrapper
# ---------------------------------------------------------------------------

def _round_up(v, m):
    return -(-v // m) * m


def _choose_batch_tile(B, d_in, d_out, x_bytes, out_bytes, align,
                       max_tile=1024, vmem_budget=24 << 20):
    """Batch tile: aligned, balanced, >= 2 blocks when B is large (both v7x
    TCs get work), capped by a VMEM budget safe on every generation (v7x has
    only 64 MiB physical VMEM; v5e/v6e have 128 MiB)."""
    if B <= align:
        return B                                            # one block == full batch
    per_row = 2 * d_in * x_bytes + 2 * d_out * out_bytes    # double-buffered x + out
    tb = min(max_tile, max(align, vmem_budget // max(per_row, 1)))
    tb = min(tb, -(-B // 2))                                # ensure >= 2 grid blocks
    n_blocks = -(-B // tb)
    tb = -(-B // n_blocks)                                  # balance the blocks
    return min(_round_up(tb, align), _round_up(B, align))


def categorical_net_forward(x, params):
    """x: [B, D_in].  Returns normalized logits (log-probs) [B, D_out], f32."""
    B, d_in = x.shape
    d_out = params["num_outputs"]
    lane_dense = params["lane_dense"]
    w = params["weight"]
    b = params["bias"]

    # Activations are expected in the weight dtype (bf16); this is a no-op then.
    if x.dtype != w.dtype:
        x = x.astype(w.dtype)

    x_bytes = jnp.dtype(x.dtype).itemsize
    w_bytes = jnp.dtype(w.dtype).itemsize

    cost = pl.CostEstimate(
        flops=2 * B * d_in * d_out,
        transcendentals=B * d_out + B,                      # exp per element + log per row
        bytes_accessed=(B * d_in * x_bytes + d_out * d_in * w_bytes
                        + d_out * 4 + B * d_out * 4),
    )

    if lane_dense:
        # Lane-dense [D_out, TB] output tiles; TB must be 128-aligned (or == B).
        tb = _choose_batch_tile(B, d_in, d_out, x_bytes, 4, align=128)
        grid = (pl.cdiv(B, tb),)
        kernel = _categorical_kernel_lane_dense
        in_specs = [
            pl.BlockSpec((tb, d_in), lambda i: (i, 0)),               # x: blocked over batch
            pl.BlockSpec((d_out, d_in), lambda i: (0, 0),
                         pipeline_mode=pl.Buffered(1)),               # W: grid-invariant
            pl.BlockSpec((d_out, 1), lambda i: (0, 0),
                         pipeline_mode=pl.Buffered(1)),               # b: grid-invariant
        ]
        out_specs = pl.BlockSpec((d_out, tb), lambda i: (0, i))
        out_shape = jax.ShapeDtypeStruct((d_out, B), jnp.float32)
        vmem_need = (2 * tb * d_in * x_bytes + 2 * d_out * tb * 4
                     + d_out * d_in * w_bytes + d_out * 4)
    else:
        # Row-major [TB, D_out] output tiles with pre-transposed W (native A@B).
        tb = _choose_batch_tile(B, d_in, d_out, x_bytes, 4, align=8)
        grid = (pl.cdiv(B, tb),)
        kernel = _categorical_kernel_row_major
        in_specs = [
            pl.BlockSpec((tb, d_in), lambda i: (i, 0)),               # x: blocked over batch
            pl.BlockSpec((d_in, d_out), lambda i: (0, 0),
                         pipeline_mode=pl.Buffered(1)),               # W^T: grid-invariant
            pl.BlockSpec((1, d_out), lambda i: (0, 0),
                         pipeline_mode=pl.Buffered(1)),               # b: grid-invariant
        ]
        out_specs = pl.BlockSpec((tb, d_out), lambda i: (i, 0))
        out_shape = jax.ShapeDtypeStruct((B, d_out), jnp.float32)
        vmem_need = (2 * tb * d_in * x_bytes + 2 * tb * d_out * 4
                     + d_in * d_out * w_bytes + d_out * 4)

    logits = pl.pallas_call(
        kernel,
        out_shape=out_shape,
        grid=grid,
        in_specs=in_specs,
        out_specs=out_specs,
        compiler_params=pltpu.CompilerParams(
            dimension_semantics=("parallel",),              # batch axis -> both TCs on v7x
            vmem_limit_bytes=int(min(max(2 * vmem_need, 16 << 20), 48 << 20)),
        ),
        cost_estimate=cost,
    )(x, w, b)

    if lane_dense:
        logits = logits.T                                   # tiny [D_out,B] -> [B,D_out]
    return logits


# ---------------------------------------------------------------------------
# Parameter prep (done once, as at nn.Module init) and distribution glue
# ---------------------------------------------------------------------------

def orthogonal_init(key, rows, cols, gain):
    """Same semantics as nn.init.orthogonal_ (deterministic given the key)."""
    n, m = (rows, cols) if rows >= cols else (cols, rows)
    a = jax.random.normal(key, (n, m), dtype=jnp.float32)
    q, r = jnp.linalg.qr(a)
    q = q * jnp.sign(jnp.diag(r))[None, :]
    if rows < cols:
        q = q.T
    return gain * q[:rows, :cols]


def init_categorical_net(key, num_inputs, num_outputs, *, param_dtype=jnp.bfloat16):
    """Orthogonal weight (gain=0.01), zero bias, stored once in the layout the
    kernel consumes (no per-call transpose/cast):
      D_out < 128  -> weight [D_out, D_in] (lane-dense path), bias [D_out, 1]
      D_out >= 128 -> weight [D_in, D_out] (pre-transposed),  bias [1, D_out]
    Weight in bf16 (halves HBM traffic, bf16-native MXU); bias stays f32.
    """
    w = orthogonal_init(key, num_outputs, num_inputs, gain=0.01)   # [D_out, D_in] f32
    lane_dense = num_outputs < 128
    if lane_dense:
        weight = w.astype(param_dtype)                              # [D_out, D_in]
        bias = jnp.zeros((num_outputs, 1), jnp.float32)
    else:
        weight = jnp.transpose(w).astype(param_dtype)               # [D_in, D_out], once
        bias = jnp.zeros((1, num_outputs), jnp.float32)
    return dict(weight=weight, bias=bias, num_outputs=num_outputs,
                lane_dense=lane_dense)


class CustomFixedCategorical:
    """JAX counterpart of the PyTorch CustomFixedCategorical (glue only)."""

    def __init__(self, logits):
        self.logits = logits                                        # normalized log-probs

    @property
    def probs(self):
        return jnp.exp(self.logits)

    def mode(self):
        return jnp.argmax(self.logits, axis=1, keepdims=True)

    def log_probs(self, actions):
        a = actions.squeeze(1).astype(jnp.int32)
        return jnp.take_along_axis(self.logits, a[:, None], axis=1)

    def sample(self, key):
        # TODO(synk): sampling uses jax.random outside the kernel (PyTorch's
        # stateful global RNG has no in-kernel equivalent).
        return jax.random.categorical(key, self.logits, axis=-1)[:, None]


# ---------------------------------------------------------------------------
# Demo / self-check
# ---------------------------------------------------------------------------

if __name__ == "__main__":
    master = jax.random.PRNGKey(0)

    def run_case(key, B, d_in, d_out):
        k_w, k_x, k_s = jax.random.split(key, 3)
        params = init_categorical_net(k_w, d_in, d_out)
        x = jax.random.normal(k_x, (B, d_in), dtype=jnp.float32).astype(jnp.bfloat16)

        logits = jax.block_until_ready(categorical_net_forward(x, params))
        dist = CustomFixedCategorical(logits=logits)

        # Pure-JAX reference on the same bf16-rounded values, all-f32 math.
        xf = x.astype(jnp.float32)
        wf = params["weight"].astype(jnp.float32)
        wf = wf if params["lane_dense"] else wf.T                   # back to [D_out, D_in]
        bf = params["bias"].reshape(1, d_out).astype(jnp.float32)
        y_ref = xf @ wf.T + bf
        logits_ref = y_ref - _logsumexp(y_ref, axis=-1, keepdims=True)

        assert logits.shape == (B, d_out)
        assert jnp.allclose(logits, logits_ref, atol=2e-4, rtol=1e-4), "logits mismatch"
        assert jnp.allclose(dist.probs, jnp.exp(logits_ref), atol=2e-4), "probs mismatch"

        # Distribution API glue (not part of the kernel hot path).
        mode = dist.mode();           assert mode.shape == (B, 1)
        lp = dist.log_probs(mode);    assert lp.shape == (B, 1)
        smp = dist.sample(k_s);       assert smp.shape == (B, 1)

    # Small action space (the module's actual use case) -> lane-dense kernel.
    run_case(jax.random.fold_in(master, 0), B=2, d_in=32, d_out=8)
    # Wide head -> pre-transposed row-major kernel, grid of 2 batch blocks.
    run_case(jax.random.fold_in(master, 1), B=16, d_in=32, d_out=128)

    print("KERNEL_OK")
</pallas_src>

<mosaic_0001>
module attributes {stable_mosaic.version = 11 : i64} {
  func.func @_categorical_kernel_lane_dense(%arg0: i32, %arg1: memref<2x32xbf16, #tpu.memory_space<vmem>>, %arg2: memref<8x32xbf16, #tpu.memory_space<vmem>>, %arg3: memref<8x1xf32, #tpu.memory_space<vmem>>, %arg4: memref<8x2xf32, #tpu.memory_space<vmem>>) attributes {dimension_semantics = [#tpu.dimension_semantics<parallel>], iteration_bounds = array<i64: 1>, scalar_prefetch = 0 : i64, scratch_operands = 0 : i64, tpu.core_type = #tpu.core_type<tc>, window_params = [{transform_indices = @transform_0, window_bounds = array<i64: 2, 32>}, {pipeline_mode = #tpu.pipeline_mode<synchronous>, transform_indices = @transform_1, window_bounds = array<i64: 8, 32>}, {pipeline_mode = #tpu.pipeline_mode<synchronous>, transform_indices = @transform_2, window_bounds = array<i64: 8, 1>}, {transform_indices = @transform_3, window_bounds = array<i64: 8, 2>}]} {
    %c0 = arith.constant 0 : index
    %c0_0 = arith.constant 0 : index
    %0 = vector.load %arg2[%c0, %c0_0] : memref<8x32xbf16, #tpu.memory_space<vmem>>, vector<8x32xbf16>
    %c0_1 = arith.constant 0 : index
    %c0_2 = arith.constant 0 : index
    %1 = vector.load %arg1[%c0_1, %c0_2] : memref<2x32xbf16, #tpu.memory_space<vmem>>, vector<2x32xbf16>
    %cst = arith.constant dense<0.000000e+00> : vector<8x2xf32>
    %2 = tpu.matmul %0, %1, %cst {dimension_numbers = #tpu.dot_dimension_numbers<[1], [1], [0], [0], [0, 0, 1, 0], [], []>} : vector<8x32xbf16>, vector<2x32xbf16>, vector<8x2xf32> -> vector<8x2xf32>
    %c0_3 = arith.constant 0 : index
    %c0_4 = arith.constant 0 : index
    %3 = vector.load %arg3[%c0_3, %c0_4] : memref<8x1xf32, #tpu.memory_space<vmem>>, vector<8x1xf32>
    %4 = vector.broadcast %3 : vector<8x1xf32> to vector<8x2xf32>
    %5 = arith.addf %2, %4 : vector<8x2xf32>
    %cst_5 = arith.constant dense<0xFF800000> : vector<2xf32>
    %6 = vector.multi_reduction <maximumf>, %5, %cst_5 [0] : vector<8x2xf32> to vector<2xf32>
    %7 = vector.shape_cast %6 : vector<2xf32> to vector<1x2xf32>
    %8 = vector.broadcast %7 : vector<1x2xf32> to vector<8x2xf32>
    %9 = arith.subf %5, %8 : vector<8x2xf32>
    %10 = math.exp %9 : vector<8x2xf32>
    %cst_6 = arith.constant dense<0.000000e+00> : vector<2xf32>
    %11 = vector.multi_reduction <add>, %10, %cst_6 [0] : vector<8x2xf32> to vector<2xf32>
    %12 = vector.shape_cast %11 : vector<2xf32> to vector<1x2xf32>
    %13 = math.log %12 : vector<1x2xf32>
    %14 = arith.addf %7, %13 : vector<1x2xf32>
    %15 = vector.broadcast %14 : vector<1x2xf32> to vector<8x2xf32>
    %16 = arith.subf %5, %15 : vector<8x2xf32>
    %c0_7 = arith.constant 0 : index
    %c0_8 = arith.constant 0 : index
    %17 = vector.load %arg4[%c0_7, %c0_8] : memref<8x2xf32, #tpu.memory_space<vmem>>, vector<8x2xf32>
    tpu.vector_store %arg4[%c0_7, %c0_8], %16 {strides = array<i32>} : memref<8x2xf32, #tpu.memory_space<vmem>>, vector<8x2xf32>,
    return
  }
  func.func @transform_0(%arg0: i32) -> (i32, i32) {
    %c0_i32 = arith.constant 0 : i32
    %c0_i32_0 = arith.constant 0 : i32
    return %arg0, %c0_i32 : i32, i32
  }
  func.func @transform_1(%arg0: i32) -> (i32, i32) {
    %c0_i32 = arith.constant 0 : i32
    %c0_i32_0 = arith.constant 0 : i32
    %c0_i32_1 = arith.constant 0 : i32
    return %c0_i32, %c0_i32_0 : i32, i32
  }
  func.func @transform_2(%arg0: i32) -> (i32, i32) {
    %c0_i32 = arith.constant 0 : i32
    %c0_i32_0 = arith.constant 0 : i32
    %c0_i32_1 = arith.constant 0 : i32
    return %c0_i32, %c0_i32_0 : i32, i32
  }
  func.func @transform_3(%arg0: i32) -> (i32, i32) {
    %c0_i32 = arith.constant 0 : i32
    %c0_i32_0 = arith.constant 0 : i32
    return %c0_i32, %arg0 : i32, i32
  }
}

</mosaic_0001>

<bundles_post_ra>
// kernel: tpu_custom_call.1
= control target key start
LH: loop header
LB: loop body
LE: loop exit
PB: predicated region body
PF: predicated region fallthrough
CT: control target
= control target key end

     0   :  { %vm23_vm0 = vcmask 261120   ;;  %v114_v0 = vmov 0.0   ;;  %vm115_vm1 = vmmov 0   ;;  %v116_v4 = vmov 0   ;;  %s152_s0 = inlined_call_operand.vmem [shape: bf16[2,32], index: 0, kind: input, shape index: {}]   ;;  %s153_s2 = inlined_call_operand.vmem [shape: f32[8,1], index: 2, kind: input, shape index: {}]   ;;  %s154_s1 = inlined_call_operand.vmem [shape: bf16[8,32], index: 1, kind: input, shape index: {}]   ;;  %s155_s3 = inlined_call_operand.vmem [shape: f32[8,2], index: 3, kind: output, shape index: {}]  }
   0x1   :  { %100 = vmatprep.subr.bf16.mxu0 %v114_v0  ;;  %v16_v1 = vld [vmem:[%s152_s0] sm:$0x1]  ;;  %102 = vmatprep.mubr.msk.bf16.mxu0 %vm115_vm1, %v114_v0  ;;  %vm70_vm2 = vcmask 15360  }
   0x2   :  { %v17_v2 = vld [vmem:[%s153_s2] sm:$0xff]  ;;  %v28_v3 = vsel %vm23_vm0, %v16_v1, 0  ;;  %109 = vset.pattern.permute.xlu0 %v116_v4 }
   0x3   :  { %101 = vmatpush3.bf16.xpose.msra.mxu0 %v28_v3  ;;  %20 = vperm.xlu0 %109, %v17_v2   ;;  %v15_v5 = vld [vmem:[%s154_s1] sm:$0xf] }
   0xa   :  { %103 = vmatmul.mubr.msk.bf16.vlgmr.msra.gmra.mrb[0].mxu0 %vm23_vm0, %v15_v5 }
  0x82   :  { %v21_v6 = vpop.permute.xlu0 %20 }
  0xdd   :  { %v64_v7 = vpop.f32.mrb[0].mxu0 }
  0xde   :  { %v65_v8 = vadd.f32 %v64_v7, %v21_v6  ;;  %v104_v9 = vpop.f32.mrb[1].mxu0 }
  0xdf   :  { %v67_v10 = vpop.f32.mrb[2].mxu0 }
  0xe0   :  { %v71_v11 = vsel %vm70_vm2, %v65_v8, -inf  ;;  %v105_v12 = vpop.f32.mrb[3].mxu0 }
  0xe1   :  { %v72_v13 = vrot.slane %v71_v11, 4 }
  0xe3   :  { %v73_v14 = vmax.f32 %v71_v11, %v72_v13 }
  0xe5   :  { %v74_v15 = vrot.slane %v73_v14, 2 }
  0xe7   :  { %v75_v16 = vmax.f32 %v73_v14, %v74_v15 }
  0xe9   :  { %v76_v17 = vrot.slane %v75_v16, 1 }
  0xeb   :  { %v77_v18 = vmax.f32 %v75_v16, %v76_v17 }
  0xed   :  { %v78_v19 = vsub.f32 %v65_v8, %v77_v18 }
  0xef   :  { %v79_v20 = vmul.f32 1.442695, %v78_v19 }
  0xf1   :  { %110 = vpow2.f32 %v79_v20 }
  0xfb   :  { %v111_v21 = vpop.eup %110 }
  0xfc   :  { %v81_v22 = vsel %vm70_vm2, %v111_v21, 0.0 }
  0xfd   :  { %v82_v23 = vrot.slane %v81_v22, 4 }
  0xff   :  { %v83_v24 = vadd.f32 %v82_v23, %v81_v22 }
 0x101   :  { %v84_v25 = vrot.slane %v83_v24, 2 }
 0x103   :  { %v85_v26 = vadd.f32 %v84_v25, %v83_v24 }
 0x105   :  { %v86_v27 = vrot.slane %v85_v26, 1 }
 0x107   :  { %v87_v28 = vadd.f32 %v86_v27, %v85_v26 }
 0x109   :  { %112 = vlog2.f32 %v87_v28 }
 0x113   :  { %v113_v29 = vpop.eup %112 }
 0x114   :  { %v89_v30 = vmul.f32 0.6931472, %v113_v29 }
 0x116   :  { %v90_v31 = vadd.f32 %v89_v30, %v77_v18 }
 0x118   :  { %v91_v32 = vsub.f32 %v65_v8, %v90_v31 }
 0x11a   :  { %92 = vst.msk [vmem:[%s155_s3] sm:$0xff] %vm70_vm2, %v91_v32 }

</bundles_post_ra>
